<compile_context>
chip_gen: v5e
topology: v5e:2x2
jax: 0.10.0
libtpu: 0.0.40
codegen_flags: <defaults>
</compile_context>

<pallas_src>
import functools

import jax
import jax.numpy as jnp
from jax.experimental import pallas as pl
from jax.experimental.pallas import tpu as pltpu


def _round_up(n, m):
    return ((n + m - 1) // m) * m


def _vmem_capacity_bytes():
    """Physical VMEM per TensorCore; conservative 64 MiB (v7x-sized) fallback."""
    try:
        return int(pltpu.get_tpu_info().vmem_capacity_bytes)
    except Exception:  # hardware query unavailable -> be conservative
        return 64 << 20


def _num_tensorcores_per_chip():
    """2 on megacore-style chips (v7x / v4), else 1 (v5e / v6e)."""
    try:
        kind = jax.devices()[0].device_kind.lower()
    except Exception:
        return 1
    return 2 if ("v7" in kind or "v4" in kind) else 1


def _supports_single_buffering():
    """Narrow feature probe for BlockSpec(..., pipeline_mode=pl.Buffered(1))."""
    if not hasattr(pl, "Buffered"):
        return False
    try:
        pl.BlockSpec((8, 128), lambda i: (0, 0), pipeline_mode=pl.Buffered(1))
    except TypeError:
        return False
    return True


def _graph_conv_kernel(K, Cp, bb, compute_dtype,
                       lt_ref, x_ref, w_ref, b_ref, o_ref, slab_ref):
    """One grid step = one group of `bb` batch elements.

    lt_ref   : (Vp, Vp)       transposed rescaled Laplacian (vertices on lanes)
    x_ref    : (bb*Cp, Vp)    features, row = b_local*Cp + c
    w_ref    : (K, Op, Cp)    linear weight regrouped per Chebyshev order
    b_ref    : (Op, 1)        bias (lane-broadcast)
    o_ref    : (bb, Op, Vp)   output
    slab_ref : (K*bb*Cp, Vp)  k-major scratch: row = k*bb*Cp + b_local*Cp + c
    """
    f32 = jnp.float32
    cdt = compute_dtype
    bbcp = bb * Cp
    Op, Vp = o_ref.shape[1], o_ref.shape[2]

    # Grid-invariant L^T; cast once (no-op when compute_dtype == f32).
    lt = lt_ref[...].astype(cdt)

    # ---- Chebyshev recursion, written straight into the k-major slab --------
    # T_k = T_{k-1} @ L^T (vertex dim stays on lanes).  Matmul inputs may be
    # bf16; accumulation (preferred_element_type) and the slab stay f32.
    x0 = x_ref[...]
    slab_ref[0:bbcp, :] = x0
    if K > 1:
        slab_ref[bbcp:2 * bbcp, :] = jnp.dot(
            x0.astype(cdt), lt, preferred_element_type=f32)
    for k in range(2, K):                                       # static unroll
        t_km1 = slab_ref[(k - 1) * bbcp:k * bbcp, :]
        t_km2 = slab_ref[(k - 2) * bbcp:(k - 1) * bbcp, :]
        slab_ref[k * bbcp:(k + 1) * bbcp, :] = (
            2.0 * jnp.dot(t_km1.astype(cdt), lt, preferred_element_type=f32)
            - t_km2)

    # ---- projection: y[b] = sum_k W_k @ T_k[b] + bias -------------------------
    # K accumulated depth-Cp matmuls read the slab directly (no gather copies);
    # the bias broadcast is hoisted out of the loops (JAX does not CSE it).
    bias_b = jnp.broadcast_to(b_ref[...], (Op, Vp))
    for b in range(bb):
        acc = bias_b
        for k in range(K):
            rows = slab_ref[k * bbcp + b * Cp:k * bbcp + (b + 1) * Cp, :]
            acc = acc + jnp.dot(w_ref[k], rows, preferred_element_type=f32)
        o_ref[b] = acc.astype(o_ref.dtype)


def graph_conv(x, laplacian, weight, bias, kernel_size, *,
               block_b=None, compute_dtype=None, out_dtype=None):
    """x: (B, C, V). laplacian: (V, V). weight: (O, C*K). bias: (O,).

    Returns (B, O, V), matching PyTorch Graph_Conv.forward.
    compute_dtype: dtype of the recursion-matmul inputs (jnp.bfloat16 for the
      MXU fast path); accumulation stays f32.  Default: f32 (bit-tight).
    """
    B, C, V = x.shape
    O = weight.shape[0]
    K = int(kernel_size)
    f32 = jnp.float32
    cdt = f32 if compute_dtype is None else jnp.dtype(compute_dtype)
    odt = x.dtype if out_dtype is None else jnp.dtype(out_dtype)

    # ---- static tile planning -------------------------------------------------
    Cp = _round_up(C, 8)        # sublane-align channels
    # TODO(synk): when C < 8 (first GCN layer has C=1) pack channels across the
    # batch (row = b*C + c with bb*C % 8 == 0) instead of zero-padding each
    # batch element to Cp=8 -- up to 8x of the recursion rows are padding here.
    Vp = _round_up(V, 128)      # lane-align vertices (lane-dense loads/stores)
    Op = _round_up(O, 8)        # sublane-align out_channels

    single_buf = _supports_single_buffering()
    n_inv_buf = 1 if single_buf else 2
    itemsize = 4

    capacity = _vmem_capacity_bytes()
    budget = int(0.85 * capacity)      # headroom for Mosaic internal scratch

    resident = n_inv_buf * (Vp * Vp + K * Op * Cp + Op * 128) * itemsize
    if cdt != f32:
        resident += Vp * Vp * 2        # in-kernel bf16 copy of L^T

    def footprint(bb):
        io = 2 * bb * (Cp + Op) * Vp * itemsize          # double-buffered x/out
        slab = K * bb * Cp * Vp * itemsize               # k-major scratch slab
        temps = 2 * bb * Cp * Vp * itemsize              # live dot result + cast
        return resident + io + slab + temps + (4 << 20)  # compiler-scratch margin

    # ---- bb: batch elements folded per grid step (VMEM + generation aware) -----
    if block_b is None:
        bb = max(1, min(B, 256 // Cp))                # recursion matmul M target
        if _num_tensorcores_per_chip() >= 2 and B > 1:
            bb = min(bb, -(-B // 2))                  # keep >= 2 steps (2-TC v7x)
        while bb > 1 and footprint(bb) > budget:      # slab/temps grow with K, V
            bb -= 1
    else:
        bb = max(1, min(int(block_b), B))
    G = -(-B // bb)              # number of grid steps (batch groups)
    Bp = G * bb                  # padded batch

    vmem_limit = min(budget, max(footprint(bb), 32 << 20))
    # TODO(synk): for very large V (Vp*Vp*4 approaching `budget`, esp. v7x's
    # 64 MiB VMEM) stream column tiles of L^T from HBM (memory_space=pl.ANY +
    # pltpu.emit_pipeline) instead of keeping the full (Vp, Vp) matrix resident.

    # ---- layout plumbing (cheap: V stays last, no big transposes) --------------
    x32 = x.astype(f32)
    if (Bp, Cp, Vp) != (B, C, V):                      # skip the pad when aligned
        x32 = jnp.pad(x32, ((0, Bp - B), (0, Cp - C), (0, Vp - V)))
    x2d = x32.reshape(Bp * Cp, Vp)                     # row = b*Cp + c

    lt = laplacian.astype(f32)
    if Vp != V:
        lt = jnp.pad(lt, ((0, Vp - V), (0, Vp - V)))
    lt = lt.T                                          # T_k = T_{k-1} @ L^T

    # nn.Linear column layout is c*K + k; regroup to (K, Op, Cp), zero-padded.
    w3 = jnp.transpose(weight.astype(f32).reshape(O, C, K), (2, 0, 1))   # (K,O,C)
    w3 = jnp.pad(w3, ((0, 0), (0, Op - O), (0, Cp - C)))

    b_col = jnp.pad(bias.astype(f32), (0, Op - O)).reshape(Op, 1)

    # Grid-invariant operands never change block index: a single pipeline buffer
    # is enough (halves the footprint of L^T, the largest resident array).
    inv = {"pipeline_mode": pl.Buffered(1)} if single_buf else {}
    in_specs = [
        pl.BlockSpec((Vp, Vp), lambda g: (0, 0), **inv),              # L^T
        pl.BlockSpec((bb * Cp, Vp), lambda g: (g, 0)),                # features
        pl.BlockSpec((K, Op, Cp), lambda g: (0, 0, 0), **inv),        # weight
        pl.BlockSpec((Op, 1), lambda g: (0, 0), **inv),               # bias
    ]
    out_specs = pl.BlockSpec((bb, Op, Vp), lambda g: (g, 0, 0))

    kernel = functools.partial(_graph_conv_kernel, K, Cp, bb, cdt)
    out = pl.pallas_call(
        kernel,
        out_shape=jax.ShapeDtypeStruct((Bp, Op, Vp), odt),
        grid_spec=pltpu.PrefetchScalarGridSpec(
            num_scalar_prefetch=0,
            grid=(G,),
            in_specs=in_specs,
            out_specs=out_specs,
            scratch_shapes=[pltpu.VMEM((K * bb * Cp, Vp), jnp.float32)],
        ),
        compiler_params=pltpu.CompilerParams(
            dimension_semantics=("parallel",),
            vmem_limit_bytes=int(vmem_limit)),
    )(lt, x2d, w3, b_col)

    return out[:B, :O, :V]


def graph_conv_ref(x, laplacian, weight, bias, kernel_size):
    """Pure-JAX transcription of the PyTorch forward, for correctness check."""
    B, C, V = x.shape
    K = kernel_size
    x0 = jnp.transpose(x, (2, 1, 0)).reshape(V, C * B)
    xs = [x0]
    if K > 1:
        xs.append(laplacian @ x0)
    for k in range(2, K):
        xs.append(2.0 * (laplacian @ xs[k - 1]) - xs[k - 2])
    xk = jnp.stack(xs, axis=0).reshape(K, V, C, B)
    xk = jnp.transpose(xk, (3, 1, 2, 0)).reshape(B * V, C * K)
    y = xk @ weight.T + bias
    y = y.reshape(B, V, -1)
    return jnp.transpose(y, (0, 2, 1))


if __name__ == "__main__":
    B, C, V = 2, 4, 16           # (Batch, Channel, Vertex)
    K = 3                        # Chebyshev kernel_size
    O = 8                        # out_channels

    key = jax.random.PRNGKey(0)
    k_x, k_w, k_b, k_a = jax.random.split(key, 4)

    # Input features.
    x = jax.random.normal(k_x, (B, C, V), dtype=jnp.float32)

    # Deterministic rescaled Laplacian of a ring graph: 2*L/lmax - I (symmetric).
    adj = jnp.zeros((V, V), dtype=jnp.float32)
    idx = jnp.arange(V)
    adj = adj.at[idx, (idx + 1) % V].set(1.0)
    adj = adj.at[(idx + 1) % V, idx].set(1.0)
    deg = jnp.sum(adj, axis=1)
    d_inv_sqrt = 1.0 / jnp.sqrt(deg)
    lap = jnp.eye(V, dtype=jnp.float32) - (d_inv_sqrt[:, None] * adj * d_inv_sqrt[None, :])
    lmax = 2.0
    rescaled_L = 2.0 * lap / lmax - jnp.eye(V, dtype=jnp.float32)

    # nn.Linear(C*K, O) parameters: uniform(-1/sqrt(fan_in), 1/sqrt(fan_in)).
    fan_in = C * K
    bound = 1.0 / jnp.sqrt(jnp.float32(fan_in))
    weight = jax.random.uniform(k_w, (O, C * K), jnp.float32, -bound, bound)
    bias = jax.random.uniform(k_b, (O,), jnp.float32, -bound, bound)

    ref = graph_conv_ref(x, rescaled_L, weight, bias, K)

    # f32 path (default): tight tolerance against the reference.
    out = graph_conv(x, rescaled_L, weight, bias, K)
    out = jax.block_until_ready(out)
    assert out.shape == (B, O, V), out.shape
    assert jnp.allclose(out, ref, atol=1e-5, rtol=1e-5), \
        float(jnp.max(jnp.abs(out - ref)))

    # Opt-in bf16 MXU fast path for the recursion matmuls (f32 accumulation):
    # validated at a looser tolerance appropriate for bf16 inputs.
    out_bf16 = graph_conv(x, rescaled_L, weight, bias, K,
                          compute_dtype=jnp.bfloat16)
    out_bf16 = jax.block_until_ready(out_bf16)
    assert jnp.allclose(out_bf16, ref, atol=5e-2, rtol=5e-2), \
        float(jnp.max(jnp.abs(out_bf16 - ref)))

    print("KERNEL_OK")
</pallas_src>

<mosaic_0001>
module attributes {stable_mosaic.version = 11 : i64} {
  func.func @_graph_conv_kernel(%arg0: i32, %arg1: memref<128x128xf32, #tpu.memory_space<vmem>>, %arg2: memref<16x128xf32, #tpu.memory_space<vmem>>, %arg3: memref<3x8x8xf32, #tpu.memory_space<vmem>>, %arg4: memref<8x1xf32, #tpu.memory_space<vmem>>, %arg5: memref<2x8x128xf32, #tpu.memory_space<vmem>>, %arg6: memref<48x128xf32, #tpu.memory_space<vmem>>) attributes {dimension_semantics = [#tpu.dimension_semantics<parallel>], iteration_bounds = array<i64: 1>, scalar_prefetch = 0 : i64, scratch_operands = 1 : i64, tpu.core_type = #tpu.core_type<tc>, window_params = [{pipeline_mode = #tpu.pipeline_mode<synchronous>, transform_indices = @transform_0, window_bounds = array<i64: 128, 128>}, {transform_indices = @transform_1, window_bounds = array<i64: 16, 128>}, {pipeline_mode = #tpu.pipeline_mode<synchronous>, transform_indices = @transform_2, window_bounds = array<i64: 3, 8, 8>}, {pipeline_mode = #tpu.pipeline_mode<synchronous>, transform_indices = @transform_3, window_bounds = array<i64: 8, 1>}, {transform_indices = @transform_4, window_bounds = array<i64: 2, 8, 128>}]} {
    %c0 = arith.constant 0 : index
    %c0_0 = arith.constant 0 : index
    %0 = vector.load %arg1[%c0, %c0_0] : memref<128x128xf32, #tpu.memory_space<vmem>>, vector<128x128xf32>
    %c0_1 = arith.constant 0 : index
    %c0_2 = arith.constant 0 : index
    %1 = vector.load %arg2[%c0_1, %c0_2] : memref<16x128xf32, #tpu.memory_space<vmem>>, vector<16x128xf32>
    %c0_3 = arith.constant 0 : index
    %c0_4 = arith.constant 0 : index
    %2 = vector.load %arg6[%c0_3, %c0_4] : memref<48x128xf32, #tpu.memory_space<vmem>>, vector<16x128xf32>
    tpu.vector_store %arg6[%c0_3, %c0_4], %1 {strides = array<i32>} : memref<48x128xf32, #tpu.memory_space<vmem>>, vector<16x128xf32>,
    %cst = arith.constant dense<0.000000e+00> : vector<16x128xf32>
    %3 = tpu.matmul %1, %0, %cst {dimension_numbers = #tpu.dot_dimension_numbers<[1], [0], [0], [1], [0, 0, 1, 1], [], []>} : vector<16x128xf32>, vector<128x128xf32>, vector<16x128xf32> -> vector<16x128xf32>
    %c16 = arith.constant 16 : index
    %c0_5 = arith.constant 0 : index
    %4 = vector.load %arg6[%c16, %c0_5] : memref<48x128xf32, #tpu.memory_space<vmem>>, vector<16x128xf32>
    tpu.vector_store %arg6[%c16, %c0_5], %3 {strides = array<i32>} : memref<48x128xf32, #tpu.memory_space<vmem>>, vector<16x128xf32>,
    %c16_6 = arith.constant 16 : index
    %c0_7 = arith.constant 0 : index
    %5 = vector.load %arg6[%c16_6, %c0_7] : memref<48x128xf32, #tpu.memory_space<vmem>>, vector<16x128xf32>
    %c0_8 = arith.constant 0 : index
    %c0_9 = arith.constant 0 : index
    %6 = vector.load %arg6[%c0_8, %c0_9] : memref<48x128xf32, #tpu.memory_space<vmem>>, vector<16x128xf32>
    %cst_10 = arith.constant dense<0.000000e+00> : vector<16x128xf32>
    %7 = tpu.matmul %5, %0, %cst_10 {dimension_numbers = #tpu.dot_dimension_numbers<[1], [0], [0], [1], [0, 0, 1, 1], [], []>} : vector<16x128xf32>, vector<128x128xf32>, vector<16x128xf32> -> vector<16x128xf32>
    %cst_11 = arith.constant 2.000000e+00 : f32
    %8 = vector.broadcast %cst_11 : f32 to vector<16x128xf32>
    %9 = arith.mulf %8, %7 : vector<16x128xf32>
    %10 = arith.subf %9, %6 : vector<16x128xf32>
    %c32 = arith.constant 32 : index
    %c0_12 = arith.constant 0 : index
    %11 = vector.load %arg6[%c32, %c0_12] : memref<48x128xf32, #tpu.memory_space<vmem>>, vector<16x128xf32>
    tpu.vector_store %arg6[%c32, %c0_12], %10 {strides = array<i32>} : memref<48x128xf32, #tpu.memory_space<vmem>>, vector<16x128xf32>,
    %c0_13 = arith.constant 0 : index
    %c0_14 = arith.constant 0 : index
    %12 = vector.load %arg4[%c0_13, %c0_14] : memref<8x1xf32, #tpu.memory_space<vmem>>, vector<8x1xf32>
    %13 = vector.shape_cast %12 : vector<8x1xf32> to vector<8x1xf32>
    %14 = vector.broadcast %13 : vector<8x1xf32> to vector<8x128xf32>
    %c0_15 = arith.constant 0 : index
    %c0_16 = arith.constant 0 : index
    %15 = vector.load %arg6[%c0_15, %c0_16] : memref<48x128xf32, #tpu.memory_space<vmem>>, vector<8x128xf32>
    %c0_17 = arith.constant 0 : index
    %c0_18 = arith.constant 0 : index
    %c0_19 = arith.constant 0 : index
    %16 = vector.load %arg3[%c0_17, %c0_18, %c0_19] : memref<3x8x8xf32, #tpu.memory_space<vmem>>, vector<1x8x8xf32>
    %17 = vector.shape_cast %16 : vector<1x8x8xf32> to vector<8x8xf32>
    %cst_20 = arith.constant dense<0.000000e+00> : vector<8x128xf32>
    %18 = tpu.matmul %17, %15, %cst_20 {dimension_numbers = #tpu.dot_dimension_numbers<[1], [0], [0], [1], [0, 0, 1, 1], [], []>} : vector<8x8xf32>, vector<8x128xf32>, vector<8x128xf32> -> vector<8x128xf32>
    %19 = arith.addf %14, %18 : vector<8x128xf32>
    %c16_21 = arith.constant 16 : index
    %c0_22 = arith.constant 0 : index
    %20 = vector.load %arg6[%c16_21, %c0_22] : memref<48x128xf32, #tpu.memory_space<vmem>>, vector<8x128xf32>
    %c1 = arith.constant 1 : index
    %c0_23 = arith.constant 0 : index
    %c0_24 = arith.constant 0 : index
    %21 = vector.load %arg3[%c1, %c0_23, %c0_24] : memref<3x8x8xf32, #tpu.memory_space<vmem>>, vector<1x8x8xf32>
    %22 = vector.shape_cast %21 : vector<1x8x8xf32> to vector<8x8xf32>
    %cst_25 = arith.constant dense<0.000000e+00> : vector<8x128xf32>
    %23 = tpu.matmul %22, %20, %cst_25 {dimension_numbers = #tpu.dot_dimension_numbers<[1], [0], [0], [1], [0, 0, 1, 1], [], []>} : vector<8x8xf32>, vector<8x128xf32>, vector<8x128xf32> -> vector<8x128xf32>
    %24 = arith.addf %19, %23 : vector<8x128xf32>
    %c32_26 = arith.constant 32 : index
    %c0_27 = arith.constant 0 : index
    %25 = vector.load %arg6[%c32_26, %c0_27] : memref<48x128xf32, #tpu.memory_space<vmem>>, vector<8x128xf32>
    %c2 = arith.constant 2 : index
    %c0_28 = arith.constant 0 : index
    %c0_29 = arith.constant 0 : index
    %26 = vector.load %arg3[%c2, %c0_28, %c0_29] : memref<3x8x8xf32, #tpu.memory_space<vmem>>, vector<1x8x8xf32>
    %27 = vector.shape_cast %26 : vector<1x8x8xf32> to vector<8x8xf32>
    %cst_30 = arith.constant dense<0.000000e+00> : vector<8x128xf32>
    %28 = tpu.matmul %27, %25, %cst_30 {dimension_numbers = #tpu.dot_dimension_numbers<[1], [0], [0], [1], [0, 0, 1, 1], [], []>} : vector<8x8xf32>, vector<8x128xf32>, vector<8x128xf32> -> vector<8x128xf32>
    %29 = arith.addf %24, %28 : vector<8x128xf32>
    %c0_31 = arith.constant 0 : index
    %c0_32 = arith.constant 0 : index
    %c0_33 = arith.constant 0 : index
    %30 = vector.load %arg5[%c0_31, %c0_32, %c0_33] : memref<2x8x128xf32, #tpu.memory_space<vmem>>, vector<1x8x128xf32>
    %31 = vector.shape_cast %30 : vector<1x8x128xf32> to vector<8x128xf32>
    %32 = vector.shape_cast %29 : vector<8x128xf32> to vector<1x8x128xf32>
    tpu.vector_store %arg5[%c0_31, %c0_32, %c0_33], %32 {strides = array<i32>} : memref<2x8x128xf32, #tpu.memory_space<vmem>>, vector<1x8x128xf32>,
    %c8 = arith.constant 8 : index
    %c0_34 = arith.constant 0 : index
    %33 = vector.load %arg6[%c8, %c0_34] : memref<48x128xf32, #tpu.memory_space<vmem>>, vector<8x128xf32>
    %c0_35 = arith.constant 0 : index
    %c0_36 = arith.constant 0 : index
    %c0_37 = arith.constant 0 : index
    %34 = vector.load %arg3[%c0_35, %c0_36, %c0_37] : memref<3x8x8xf32, #tpu.memory_space<vmem>>, vector<1x8x8xf32>
    %35 = vector.shape_cast %34 : vector<1x8x8xf32> to vector<8x8xf32>
    %cst_38 = arith.constant dense<0.000000e+00> : vector<8x128xf32>
    %36 = tpu.matmul %35, %33, %cst_38 {dimension_numbers = #tpu.dot_dimension_numbers<[1], [0], [0], [1], [0, 0, 1, 1], [], []>} : vector<8x8xf32>, vector<8x128xf32>, vector<8x128xf32> -> vector<8x128xf32>
    %37 = arith.addf %14, %36 : vector<8x128xf32>
    %c24 = arith.constant 24 : index
    %c0_39 = arith.constant 0 : index
    %38 = vector.load %arg6[%c24, %c0_39] : memref<48x128xf32, #tpu.memory_space<vmem>>, vector<8x128xf32>
    %c1_40 = arith.constant 1 : index
    %c0_41 = arith.constant 0 : index
    %c0_42 = arith.constant 0 : index
    %39 = vector.load %arg3[%c1_40, %c0_41, %c0_42] : memref<3x8x8xf32, #tpu.memory_space<vmem>>, vector<1x8x8xf32>
    %40 = vector.shape_cast %39 : vector<1x8x8xf32> to vector<8x8xf32>
    %cst_43 = arith.constant dense<0.000000e+00> : vector<8x128xf32>
    %41 = tpu.matmul %40, %38, %cst_43 {dimension_numbers = #tpu.dot_dimension_numbers<[1], [0], [0], [1], [0, 0, 1, 1], [], []>} : vector<8x8xf32>, vector<8x128xf32>, vector<8x128xf32> -> vector<8x128xf32>
    %42 = arith.addf %37, %41 : vector<8x128xf32>
    %c40 = arith.constant 40 : index
    %c0_44 = arith.constant 0 : index
    %43 = vector.load %arg6[%c40, %c0_44] : memref<48x128xf32, #tpu.memory_space<vmem>>, vector<8x128xf32>
    %c2_45 = arith.constant 2 : index
    %c0_46 = arith.constant 0 : index
    %c0_47 = arith.constant 0 : index
    %44 = vector.load %arg3[%c2_45, %c0_46, %c0_47] : memref<3x8x8xf32, #tpu.memory_space<vmem>>, vector<1x8x8xf32>
    %45 = vector.shape_cast %44 : vector<1x8x8xf32> to vector<8x8xf32>
    %cst_48 = arith.constant dense<0.000000e+00> : vector<8x128xf32>
    %46 = tpu.matmul %45, %43, %cst_48 {dimension_numbers = #tpu.dot_dimension_numbers<[1], [0], [0], [1], [0, 0, 1, 1], [], []>} : vector<8x8xf32>, vector<8x128xf32>, vector<8x128xf32> -> vector<8x128xf32>
    %47 = arith.addf %42, %46 : vector<8x128xf32>
    %c1_49 = arith.constant 1 : index
    %c0_50 = arith.constant 0 : index
    %c0_51 = arith.constant 0 : index
    %48 = vector.load %arg5[%c1_49, %c0_50, %c0_51] : memref<2x8x128xf32, #tpu.memory_space<vmem>>, vector<1x8x128xf32>
    %49 = vector.shape_cast %48 : vector<1x8x128xf32> to vector<8x128xf32>
    %50 = vector.shape_cast %47 : vector<8x128xf32> to vector<1x8x128xf32>
    tpu.vector_store %arg5[%c1_49, %c0_50, %c0_51], %50 {strides = array<i32>} : memref<2x8x128xf32, #tpu.memory_space<vmem>>, vector<1x8x128xf32>,
    return
  }
  func.func @transform_0(%arg0: i32) -> (i32, i32) {
    %c0_i32 = arith.constant 0 : i32
    %c0_i32_0 = arith.constant 0 : i32
    %c0_i32_1 = arith.constant 0 : i32
    return %c0_i32, %c0_i32_0 : i32, i32
  }
  func.func @transform_1(%arg0: i32) -> (i32, i32) {
    %c0_i32 = arith.constant 0 : i32
    %c0_i32_0 = arith.constant 0 : i32
    return %arg0, %c0_i32 : i32, i32
  }
  func.func @transform_2(%arg0: i32) -> (i32, i32, i32) {
    %c0_i32 = arith.constant 0 : i32
    %c0_i32_0 = arith.constant 0 : i32
    %c0_i32_1 = arith.constant 0 : i32
    %c0_i32_2 = arith.constant 0 : i32
    return %c0_i32, %c0_i32_0, %c0_i32_1 : i32, i32, i32
  }
  func.func @transform_3(%arg0: i32) -> (i32, i32) {
    %c0_i32 = arith.constant 0 : i32
    %c0_i32_0 = arith.constant 0 : i32
    %c0_i32_1 = arith.constant 0 : i32
    return %c0_i32, %c0_i32_0 : i32, i32
  }
  func.func @transform_4(%arg0: i32) -> (i32, i32, i32) {
    %c0_i32 = arith.constant 0 : i32
    %c0_i32_0 = arith.constant 0 : i32
    %c0_i32_1 = arith.constant 0 : i32
    return %arg0, %c0_i32, %c0_i32_0 : i32, i32, i32
  }
}

</mosaic_0001>

<bundles_post_ra>
// kernel: tpu_custom_call.1
= control target key start
LH: loop header
LB: loop body
LE: loop exit
PB: predicated region body
PF: predicated region fallthrough
CT: control target
= control target key end

     0   :  { %9 = vsyncpa [#allocation4], 0  ;;  %s517_s0 = inlined_call_operand.hbm [shape: f32[128,128], index: 0, kind: input, shape index: {}]   ;;  %s518_s1 = inlined_call_operand.hbm [shape: f32[16,128], index: 1, kind: input, shape index: {}]   ;;  %s519_s2 = inlined_call_operand.hbm [shape: f32[3,8,8], index: 2, kind: input, shape index: {}]   ;;  %s520_s3 = inlined_call_operand.vmem [shape: f32[8,1], index: 3, kind: input, shape index: {}]   ;;  %s521_s4 = inlined_call_operand.hbm [shape: f32[2,8,128], index: 4, kind: output, shape index: {}]  }
   0x1   :  { %10 = vsyncpa [#allocation7], 0 }
   0x2   :  { %11 = vsyncpa [#allocation5], 0  ;;  %s29_s17 = sshll.u32 %s518_s1, 4  ;;  %s447_s18 = smov [#allocation6]   ;;  %s30_s17 = int_to_ptr.hbm [resolvable:$true] %s29_s17 }
   0x3   :  { %s31_s19 = sshll.u32 %s447_s18, 4  ;;  %s16_s22 = sshll.u32 %s517_s0, 4  ;;  %s32_s19 = int_to_ptr.vmem [resolvable:$true] %s31_s19  ;;  %s17_s22 = int_to_ptr.hbm [resolvable:$true] %s16_s22 }
   0x4   :  { %s448_s23 = smov 128   ;;  %s449_s24 = smov 8  }
   0x5   :  { %37 = dma.hbm_to_vmem [thread:$0]  %s30_s17, 256, %s32_s19, [#allocation7], %s448_s23, %s448_s23, %s449_s24  }
   0x6   :  { %s450_s25 = smov [#allocation3]   ;;  %s42_s1 = sshll.u32 %s519_s2, 4  ;;  %s43_s1 = int_to_ptr.hbm [resolvable:$true] %s42_s1 }
   0x7   :  { %s18_s26 = sshll.u32 %s450_s25, 4  ;;  %s451_s0 = smov [#allocation8]   ;;  %s19_s26 = int_to_ptr.vmem [resolvable:$true] %s18_s26 }
   0x8   :  { %24 = dma.hbm_to_vmem [thread:$0]  %s17_s22, 2048, %s19_s26, [#allocation4], %s448_s23, %s448_s23, %s449_s24  }
   0x9   :  { %s44_s29 = sshll.u32 %s451_s0, 4  ;;  %s45_s29 = int_to_ptr.vmem [resolvable:$true] %s44_s29 }
   0xa   :  { %50 = dma.hbm_to_vmem [thread:$0]  %s43_s1, 384, %s45_s29, [#allocation7], %s448_s23, %s448_s23, %s449_s24  }
   0xb   :  { %441 = dma.done.wait [#allocation4], 2048  }
   0xc   :  { %442 = vsyncadd [#allocation4], 4294965248 }
   0xd   :  { %443 = dma.done.wait [#allocation7], 640  }
   0xe   :  { %444 = vsyncadd [#allocation7], 4294966656  ;;  %v80_v0 = vld [vmem:[#allocation3 + $0x78] sm:$0xff]  ;;  %v79_v1 = vld [vmem:[#allocation3 + $0x70] sm:$0xff]  ;;  %vm151_vm0 = vcmask 64512   ;;  %v452_v22 = vmov 0  }
   0xf   :  { %85 = vmatpush.msra.mxu0 %v80_v0  ;;  %114 = vmatpush.msra.mxu1 %v80_v0  ;;  %v78_v2 = vld [vmem:[#allocation3 + $0x68] sm:$0xff]  ;;  %v77_v3 = vld [vmem:[#allocation3 + $0x60] sm:$0xff]  ;;  %v76_v5 = vld [vmem:[#allocation3 + $0x58] sm:$0xff]  ;;  %s317_s8 = sshll.u32 %s521_s4, 4  ;;  %s318_s8 = int_to_ptr.hbm [resolvable:$true] %s317_s8 }
  0x10   :  { %v497_v4 = vld [vmem:[#allocation6] sm:$0xff]  ;;  %v75_v6 = vld [vmem:[#allocation3 + $0x50] sm:$0xff]  ;;  %v74_v7 = vld [vmem:[#allocation3 + $0x48] sm:$0xff]  ;;  %344 = vset.pattern.permute.xlu0 %v452_v22 }
  0x11   :  { %86 = vmatpush.msra.mxu0 %v79_v1  ;;  %115 = vmatpush.msra.mxu1 %v79_v1  ;;  %v73_v8 = vld [vmem:[#allocation3 + $0x40] sm:$0xff]  ;;  %v72_v9 = vld [vmem:[#allocation3 + $0x38] sm:$0xff]  ;;  %v71_v10 = vld [vmem:[#allocation3 + $0x30] sm:$0xff] }
  0x12   :  { %170 = vmatpush.msra.mxu2 %v497_v4  ;;  %v70_v11 = vld [vmem:[#allocation3 + $0x28] sm:$0xff]  ;;  %v69_v12 = vld [vmem:[#allocation3 + $0x20] sm:$0xff]  ;;  %v68_v13 = vld [vmem:[#allocation3 + $0x18] sm:$0xff] }
  0x13   :  { %87 = vmatpush.msra.mxu0 %v78_v2  ;;  %116 = vmatpush.msra.mxu1 %v78_v2  ;;  %v67_v14 = vld [vmem:[#allocation3 + $0x10] sm:$0xff]  ;;  %v66_v15 = vld [vmem:[#allocation3 + $0x8] sm:$0xff]  ;;  %v65_v16 = vld [vmem:[#allocation3] sm:$0xff] }
  0x14   :  { %v82_v17 = vld [vmem:[#allocation6 + $0x8] sm:$0xff]  ;;  %v150_v20 = vld [vmem:[#allocation8] sm:$0xff]  ;;  %v178_v21 = vld [vmem:[#allocation8 + $0x8] sm:$0xff] }
  0x15   :  { %88 = vmatpush.msra.mxu0 %v77_v3  ;;  %117 = vmatpush.msra.mxu1 %v77_v3  ;;  %v143_v23 = vld [vmem:[%s520_s3] sm:$0xff]  ;;  %s453_s3 = smov [#allocation9]  }
  0x16   :  { %331 = vmatmul.msk.f32.vlgmr.msra.gmra.mxu2 %vm151_vm0, %v150_v20  ;;  %146 = vperm.xlu0 %344, %v143_v23   ;;  %v205_v27 = vld [vmem:[#allocation8 + $0x10] sm:$0xff]  ;;  %s315_s5 = sshll.u32 %s453_s3, 4  ;;  %s316_s5 = int_to_ptr.vmem [resolvable:$true] %s315_s5 }
  0x17   :  { %89 = vmatpush.msra.mxu0 %v76_v5  ;;  %118 = vmatpush.msra.mxu1 %v76_v5 }
  0x19   :  { %90 = vmatpush.msra.mxu0 %v75_v6  ;;  %119 = vmatpush.msra.mxu1 %v75_v6 }
  0x1b   :  { %91 = vmatpush.msra.mxu0 %v74_v7  ;;  %120 = vmatpush.msra.mxu1 %v74_v7 }
  0x1d   :  { %92 = vmatpush.msra.mxu0 %v73_v8  ;;  %121 = vmatpush.msra.mxu1 %v73_v8 }
  0x1f   :  { %93 = vmatpush.msra.mxu0 %v72_v9  ;;  %122 = vmatpush.msra.mxu1 %v72_v9 }
  0x21   :  { %94 = vmatpush.msra.mxu0 %v71_v10  ;;  %123 = vmatpush.msra.mxu1 %v71_v10 }
  0x23   :  { %95 = vmatpush.msra.mxu0 %v70_v11  ;;  %124 = vmatpush.msra.mxu1 %v70_v11 }
  0x25   :  { %96 = vmatpush.msra.mxu0 %v69_v12  ;;  %125 = vmatpush.msra.mxu1 %v69_v12 }
  0x27   :  { %97 = vmatpush.msra.mxu0 %v68_v13  ;;  %126 = vmatpush.msra.mxu1 %v68_v13 }
  0x29   :  { %98 = vmatpush.msra.mxu0 %v67_v14  ;;  %127 = vmatpush.msra.mxu1 %v67_v14 }
  0x2b   :  { %99 = vmatpush.msra.mxu0 %v66_v15  ;;  %128 = vmatpush.msra.mxu1 %v66_v15 }
  0x2d   :  { %100 = vmatpush.msra.mxu0 %v65_v16  ;;  %129 = vmatpush.msra.mxu1 %v65_v16 }
  0x2e   :  { %101 = vmatmul.f32.vlgmr.msra.gmra.mxu0 %v497_v4 }
  0x36   :  { %104 = vmatmul.f32.gmra.mxu0 %v82_v17 }
  0x88   :  { %v147_v33 = vpop.permute.xlu0 %146 }
  0x99   :  { %v172_v32 = vpop.f32.mrf.mxu2 }
  0x9a   :  { %v175_v34 = vadd.f32 %v172_v32, %v147_v33 }
  0xab   :  { %v102_v18 = vpop.f32.mrf.mxu0 }
  0xac   :  { %130 = vmatmul.f32.vlgmr.msra.gmra.mxu1 %v102_v18  ;;  %197 = vmatpush.msra.mxu3 %v102_v18 }
  0xad   :  { %332 = vmatmul.msk.f32.vlgmr.msra.gmra.mxu3 %vm151_vm0, %v178_v21 }
  0xae   :  { %251 = vmatpush.msrb.mxu3 %v82_v17 }
  0xb3   :  { %v105_v19 = vpop.f32.mrf.mxu0 }
  0xb4   :  { %133 = vmatmul.f32.gmra.mxu1 %v105_v19 }
  0xb5   :  { %334 = vmatmul.msk.f32.vlgmr.msrb.gmra.mxu3 %vm151_vm0, %v150_v20 }
 0x129   :  { %v131_v24 = vpop.f32.mrf.mxu1 }
 0x12a   :  { %v137_v25 = vmul.f32 2.0, %v131_v24 }
 0x12c   :  { %v139_v26 = vsub.f32 %v137_v25, %v497_v4 }
 0x12e   :  { %224 = vmatpush.msrb.mxu2 %v139_v26 }
 0x12f   :  { %333 = vmatmul.msk.f32.vlgmr.msrb.gmra.mxu2 %vm151_vm0, %v205_v27 }
 0x130   :  { %277 = vmatpush.msra.mxu2 %v105_v19  ;;  %v199_v31 = vpop.f32.mrf.mxu3 }
 0x131   :  { %v134_v28 = vpop.f32.mrf.mxu1  ;;  %v202_v36 = vadd.f32 %v199_v31, %v175_v34 }
 0x132   :  { %v138_v29 = vmul.f32 2.0, %v134_v28 }
 0x134   :  { %v140_v30 = vsub.f32 %v138_v29, %v82_v17 }
 0x136   :  { %303 = vmatpush.msra.mxu3 %v140_v30 }
 0x137   :  { %336 = vmatmul.msk.f32.vlgmr.msra.gmra.mxu3 %vm151_vm0, %v205_v27  ;;  %335 = vmatmul.msk.f32.vlgmr.msra.gmra.mxu2 %vm151_vm0, %v178_v21 }
 0x138   :  { %v253_v35 = vpop.f32.mrf.mxu3 }
 0x139   :  { %v256_v39 = vadd.f32 %v253_v35, %v147_v33 }
 0x1b2   :  { %v226_v37 = vpop.f32.mrf.mxu2 }
 0x1b3   :  { %v229_v38 = vadd.f32 %v226_v37, %v202_v36 }
 0x1b5   :  { %230 = vst [vmem:[#allocation9] sm:$0xff] %v229_v38 }
 0x1ba   :  { %v279_v40 = vpop.f32.mrf.mxu2  ;;  %v305_v41 = vpop.f32.mrf.mxu3 }
 0x1bb   :  { %v282_v42 = vadd.f32 %v279_v40, %v256_v39 }
 0x1bd   :  { %v308_v43 = vadd.f32 %v305_v41, %v282_v42 }
 0x1bf   :  { %310 = vst [vmem:[#allocation9 + $0x8] sm:$0xff] %v308_v43 }
 0x1c0   :  { %323 = dma.vmem_to_hbm [thread:$0]  %s316_s5, 256, %s318_s8, [#allocation5], %s448_s23, %s448_s23, %s449_s24  }
 0x1c1   :  { %445 = dma.done.wait [#allocation5], 256  }
 0x1c2   :  { %446 = vsyncadd [#allocation5], 4294967040 }
 0x1c3   :  { %328 = vsyncpa [#allocation4], 1 }
 0x1c4   :  { %329 = vsyncpa [#allocation7], 1 }
 0x1c5   :  { %330 = vsyncpa [#allocation5], 1 }

</bundles_post_ra>
